<compile_context>
chip_gen: v7x
topology: tpu7x:2x2x1
jax: 0.10.0
libtpu: 0.0.40
codegen_flags: <defaults>
</compile_context>

<pallas_src>
import functools

import jax
import jax.numpy as jnp
from jax.experimental import pallas as pl
from jax.experimental.pallas import tpu as pltpu

INPUT_SIZE = 7
HID1, HID2, HID3, OUT = 64, 32, 16, 1
LANE = 128


def mlp_kernel(x_ref, w1_ref, b1_ref, w2_ref, b2_ref, w3_ref, b3_ref,
               w4_ref, b4_ref, o_ref):
    """Fused 4-layer MLP for one batch tile, batch on the lane axis.

    x_ref : (7, TB)   bf16   (batch on the 128-wide lane axis)
    wN    : (out, in) bf16   (PyTorch nn.Linear weight layout)
    bN    : (out, 1)  f32    (broadcast along lanes)
    o_ref : (1, TB)   f32    lane-dense output block
    Matmuls run on the MXU with f32 accumulation; bias/ReLU/sigmoid in f32.
    """
    x = x_ref[...]                                               # (7, TB) bf16

    h1 = jnp.dot(w1_ref[...], x, preferred_element_type=jnp.float32)
    h1 = jnp.maximum(h1 + b1_ref[...], 0.0)                      # (64, TB) f32
    # dropout: eval-mode identity
    # TODO(synk): training-mode stochastic dropout (pltpu.prng_random_bits mask).

    h2 = jnp.dot(w2_ref[...], h1.astype(w2_ref.dtype),
                 preferred_element_type=jnp.float32)
    h2 = jnp.maximum(h2 + b2_ref[...], 0.0)                      # (32, TB)

    h3 = jnp.dot(w3_ref[...], h2.astype(w3_ref.dtype),
                 preferred_element_type=jnp.float32)
    h3 = jnp.maximum(h3 + b3_ref[...], 0.0)                      # (16, TB)

    logits = jnp.dot(w4_ref[...], h3.astype(w4_ref.dtype),
                     preferred_element_type=jnp.float32)         # (1, TB)
    o_ref[...] = jax.nn.sigmoid(logits + b4_ref[...])            # EUP sigmoid


@functools.partial(jax.jit, static_argnames=("tile_b",))
def _mlp_pallas(x_t, w1, b1, w2, b2, w3, b3, w4, b4, *, tile_b):
    F, b_pad = x_t.shape
    grid = (b_pad // tile_b,)

    # Weights/biases are ~12 KB total: constant block index -> DMA'd once.
    const2d = lambda arr: pl.BlockSpec(arr.shape, lambda i: (0, 0))

    return pl.pallas_call(
        mlp_kernel,
        out_shape=jax.ShapeDtypeStruct((OUT, b_pad), jnp.float32),
        grid_spec=pltpu.PrefetchScalarGridSpec(
            num_scalar_prefetch=0,
            grid=grid,
            in_specs=[
                pl.BlockSpec((F, tile_b), lambda i: (0, i)),     # x tile
                const2d(w1), const2d(b1),
                const2d(w2), const2d(b2),
                const2d(w3), const2d(b3),
                const2d(w4), const2d(b4),
            ],
            out_specs=pl.BlockSpec((OUT, tile_b), lambda i: (0, i)),
        ),
        compiler_params=pltpu.CompilerParams(
            dimension_semantics=("parallel",)),   # batch axis shards across TCs
    )(x_t, w1, b1, w2, b2, w3, b3, w4, b4)


def neural_net_forward(x, params, *, tile_b=1024):
    """x: (B, 7) float32. Returns (B, 1) float32 = sigmoid(fc4(relu(...)))."""
    B, F = x.shape
    assert F == INPUT_SIZE

    # Pad batch to a lane-dense multiple of 128; one block if batch is small.
    b_lane = -(-B // LANE) * LANE
    tb = min(tile_b, b_lane)
    b_pad = -(-b_lane // tb) * tb

    x_pad = jnp.zeros((b_pad, F), jnp.float32).at[:B].set(x)
    x_t = x_pad.T.astype(jnp.bfloat16)                 # (7, b_pad), batch on lanes

    # bf16 MXU operands, f32 accumulation; biases stay f32 shaped (out, 1).
    w = [params[f"w{i}"].astype(jnp.bfloat16) for i in range(1, 5)]
    b = [params[f"b{i}"].astype(jnp.float32) for i in range(1, 5)]

    out_t = _mlp_pallas(x_t, w[0], b[0], w[1], b[1], w[2], b[2], w[3], b[3],
                        tile_b=tb)                     # (1, b_pad)
    return out_t.T[:B]                                 # (B, 1), padded rows dropped


def init_params(key):
    """Deterministic init mimicking torch.nn.Linear (uniform +/- 1/sqrt(fan_in)).

    Weights stored in PyTorch layout (out_features, in_features); biases (out, 1).
    """
    dims = [(INPUT_SIZE, HID1), (HID1, HID2), (HID2, HID3), (HID3, OUT)]
    params = {}
    for idx, (fan_in, fan_out) in enumerate(dims, start=1):
        key, kw, kb = jax.random.split(key, 3)
        bound = 1.0 / (fan_in ** 0.5)
        params[f"w{idx}"] = jax.random.uniform(
            kw, (fan_out, fan_in), jnp.float32, -bound, bound)
        params[f"b{idx}"] = jax.random.uniform(
            kb, (fan_out, 1), jnp.float32, -bound, bound)
    return params


def reference_forward_bf16(x, params):
    """Mirrors the kernel math exactly: bf16 operands, f32 accumulation."""
    h = x.astype(jnp.bfloat16)
    for idx in range(1, 4):
        w = params[f"w{idx}"].astype(jnp.bfloat16)
        h = jnp.maximum(
            jnp.dot(h, w.T, preferred_element_type=jnp.float32)
            + params[f"b{idx}"].T, 0.0)
        h = h.astype(jnp.bfloat16)
    w4 = params["w4"].astype(jnp.bfloat16)
    logits = jnp.dot(h, w4.T, preferred_element_type=jnp.float32) + params["b4"].T
    return jax.nn.sigmoid(logits)


def reference_forward_f32(x, params):
    """Pure f32 reference (PyTorch semantics, eval-mode dropout)."""
    h = x
    for idx in range(1, 4):
        h = jnp.maximum(h @ params[f"w{idx}"].T + params[f"b{idx}"].T, 0.0)
    return jax.nn.sigmoid(h @ params["w4"].T + params["b4"].T)


if __name__ == "__main__":
    key = jax.random.PRNGKey(0)
    key, kx1, kx2 = jax.random.split(key, 3)
    params = init_params(key)

    # Small, non-lane-aligned batch (wrapper pads to 128, single grid step).
    batch = 16
    x = jax.random.normal(kx1, (batch, INPUT_SIZE), jnp.float32)
    out = jax.block_until_ready(neural_net_forward(x, params))
    assert out.shape == (batch, OUT)
    assert jnp.allclose(out, reference_forward_bf16(x, params),
                        atol=1e-4, rtol=1e-4), "mismatch vs bf16 reference"
    assert jnp.allclose(out, reference_forward_f32(x, params),
                        atol=5e-2), "mismatch vs f32 reference"

    # Larger batch exercising padding + multi-tile grid (2560 rows -> 3 tiles of 1024).
    batch2 = 2560
    x2 = jax.random.normal(kx2, (batch2, INPUT_SIZE), jnp.float32)
    out2 = jax.block_until_ready(neural_net_forward(x2, params, tile_b=1024))
    assert out2.shape == (batch2, OUT)
    assert jnp.allclose(out2, reference_forward_bf16(x2, params),
                        atol=1e-4, rtol=1e-4), "mismatch vs bf16 reference (large)"

    print("KERNEL_OK")
</pallas_src>

<mosaic_0001>
module attributes {stable_mosaic.version = 11 : i64} {
  func.func @mlp_kernel(%arg0: i32, %arg1: memref<7x128xbf16, #tpu.memory_space<vmem>>, %arg2: memref<64x7xbf16, #tpu.memory_space<vmem>>, %arg3: memref<64x1xf32, #tpu.memory_space<vmem>>, %arg4: memref<32x64xbf16, #tpu.memory_space<vmem>>, %arg5: memref<32x1xf32, #tpu.memory_space<vmem>>, %arg6: memref<16x32xbf16, #tpu.memory_space<vmem>>, %arg7: memref<16x1xf32, #tpu.memory_space<vmem>>, %arg8: memref<1x16xbf16, #tpu.memory_space<vmem>>, %arg9: memref<1x1xf32, #tpu.memory_space<vmem>>, %arg10: memref<1x128xf32, #tpu.memory_space<vmem>>) attributes {dimension_semantics = [#tpu.dimension_semantics<parallel>], iteration_bounds = array<i64: 1>, scalar_prefetch = 0 : i64, scratch_operands = 0 : i64, tpu.core_type = #tpu.core_type<tc>, window_params = [{transform_indices = @transform_0, window_bounds = array<i64: 7, 128>}, {pipeline_mode = #tpu.pipeline_mode<synchronous>, transform_indices = @transform_1, window_bounds = array<i64: 64, 7>}, {pipeline_mode = #tpu.pipeline_mode<synchronous>, transform_indices = @transform_2, window_bounds = array<i64: 64, 1>}, {pipeline_mode = #tpu.pipeline_mode<synchronous>, transform_indices = @transform_3, window_bounds = array<i64: 32, 64>}, {pipeline_mode = #tpu.pipeline_mode<synchronous>, transform_indices = @transform_4, window_bounds = array<i64: 32, 1>}, {pipeline_mode = #tpu.pipeline_mode<synchronous>, transform_indices = @transform_5, window_bounds = array<i64: 16, 32>}, {pipeline_mode = #tpu.pipeline_mode<synchronous>, transform_indices = @transform_6, window_bounds = array<i64: 16, 1>}, {pipeline_mode = #tpu.pipeline_mode<synchronous>, transform_indices = @transform_7, window_bounds = array<i64: 1, 16>}, {pipeline_mode = #tpu.pipeline_mode<synchronous>, transform_indices = @transform_8, window_bounds = array<i64: 1, 1>}, {transform_indices = @transform_9, window_bounds = array<i64: 1, 128>}]} {
    %c0 = arith.constant 0 : index
    %c0_0 = arith.constant 0 : index
    %0 = vector.load %arg1[%c0, %c0_0] : memref<7x128xbf16, #tpu.memory_space<vmem>>, vector<7x128xbf16>
    %c0_1 = arith.constant 0 : index
    %c0_2 = arith.constant 0 : index
    %1 = vector.load %arg2[%c0_1, %c0_2] : memref<64x7xbf16, #tpu.memory_space<vmem>>, vector<64x7xbf16>
    %cst = arith.constant dense<0.000000e+00> : vector<64x128xf32>
    %2 = tpu.matmul %1, %0, %cst {dimension_numbers = #tpu.dot_dimension_numbers<[1], [0], [0], [1], [0, 0, 1, 1], [], []>} : vector<64x7xbf16>, vector<7x128xbf16>, vector<64x128xf32> -> vector<64x128xf32>
    %c0_3 = arith.constant 0 : index
    %c0_4 = arith.constant 0 : index
    %3 = vector.load %arg3[%c0_3, %c0_4] : memref<64x1xf32, #tpu.memory_space<vmem>>, vector<64x1xf32>
    %4 = vector.broadcast %3 : vector<64x1xf32> to vector<64x128xf32>
    %5 = arith.addf %2, %4 : vector<64x128xf32>
    %cst_5 = arith.constant 0.000000e+00 : f32
    %6 = vector.broadcast %cst_5 : f32 to vector<64x128xf32>
    %7 = arith.maximumf %5, %6 : vector<64x128xf32>
    %c0_6 = arith.constant 0 : index
    %c0_7 = arith.constant 0 : index
    %8 = vector.load %arg4[%c0_6, %c0_7] : memref<32x64xbf16, #tpu.memory_space<vmem>>, vector<32x64xbf16>
    %9 = arith.truncf %7 : vector<64x128xf32> to vector<64x128xbf16>
    %cst_8 = arith.constant dense<0.000000e+00> : vector<32x128xf32>
    %10 = tpu.matmul %8, %9, %cst_8 {dimension_numbers = #tpu.dot_dimension_numbers<[1], [0], [0], [1], [0, 0, 1, 1], [], []>} : vector<32x64xbf16>, vector<64x128xbf16>, vector<32x128xf32> -> vector<32x128xf32>
    %c0_9 = arith.constant 0 : index
    %c0_10 = arith.constant 0 : index
    %11 = vector.load %arg5[%c0_9, %c0_10] : memref<32x1xf32, #tpu.memory_space<vmem>>, vector<32x1xf32>
    %12 = vector.broadcast %11 : vector<32x1xf32> to vector<32x128xf32>
    %13 = arith.addf %10, %12 : vector<32x128xf32>
    %cst_11 = arith.constant 0.000000e+00 : f32
    %14 = vector.broadcast %cst_11 : f32 to vector<32x128xf32>
    %15 = arith.maximumf %13, %14 : vector<32x128xf32>
    %c0_12 = arith.constant 0 : index
    %c0_13 = arith.constant 0 : index
    %16 = vector.load %arg6[%c0_12, %c0_13] : memref<16x32xbf16, #tpu.memory_space<vmem>>, vector<16x32xbf16>
    %17 = arith.truncf %15 : vector<32x128xf32> to vector<32x128xbf16>
    %cst_14 = arith.constant dense<0.000000e+00> : vector<16x128xf32>
    %18 = tpu.matmul %16, %17, %cst_14 {dimension_numbers = #tpu.dot_dimension_numbers<[1], [0], [0], [1], [0, 0, 1, 1], [], []>} : vector<16x32xbf16>, vector<32x128xbf16>, vector<16x128xf32> -> vector<16x128xf32>
    %c0_15 = arith.constant 0 : index
    %c0_16 = arith.constant 0 : index
    %19 = vector.load %arg7[%c0_15, %c0_16] : memref<16x1xf32, #tpu.memory_space<vmem>>, vector<16x1xf32>
    %20 = vector.broadcast %19 : vector<16x1xf32> to vector<16x128xf32>
    %21 = arith.addf %18, %20 : vector<16x128xf32>
    %cst_17 = arith.constant 0.000000e+00 : f32
    %22 = vector.broadcast %cst_17 : f32 to vector<16x128xf32>
    %23 = arith.maximumf %21, %22 : vector<16x128xf32>
    %c0_18 = arith.constant 0 : index
    %c0_19 = arith.constant 0 : index
    %24 = vector.load %arg8[%c0_18, %c0_19] : memref<1x16xbf16, #tpu.memory_space<vmem>>, vector<1x16xbf16>
    %25 = arith.truncf %23 : vector<16x128xf32> to vector<16x128xbf16>
    %cst_20 = arith.constant dense<0.000000e+00> : vector<1x128xf32>
    %26 = tpu.matmul %24, %25, %cst_20 {dimension_numbers = #tpu.dot_dimension_numbers<[1], [0], [0], [1], [0, 0, 1, 1], [], []>} : vector<1x16xbf16>, vector<16x128xbf16>, vector<1x128xf32> -> vector<1x128xf32>
    %c0_21 = arith.constant 0 : index
    %c0_22 = arith.constant 0 : index
    %27 = vector.load %arg9[%c0_21, %c0_22] : memref<1x1xf32, #tpu.memory_space<vmem>>, vector<1x1xf32>
    %28 = vector.broadcast %27 : vector<1x1xf32> to vector<1x128xf32>
    %29 = arith.addf %26, %28 : vector<1x128xf32>
    %30 = arith.negf %29 : vector<1x128xf32>
    %31 = math.exp %30 : vector<1x128xf32>
    %cst_23 = arith.constant 1.000000e+00 : f32
    %32 = vector.broadcast %cst_23 : f32 to vector<1x128xf32>
    %33 = arith.addf %32, %31 : vector<1x128xf32>
    %34 = arith.divf %32, %33 : vector<1x128xf32>
    %c0_24 = arith.constant 0 : index
    %c0_25 = arith.constant 0 : index
    %35 = vector.load %arg10[%c0_24, %c0_25] : memref<1x128xf32, #tpu.memory_space<vmem>>, vector<1x128xf32>
    tpu.vector_store %arg10[%c0_24, %c0_25], %34 {strides = array<i32>} : memref<1x128xf32, #tpu.memory_space<vmem>>, vector<1x128xf32>,
    return
  }
  func.func @transform_0(%arg0: i32) -> (i32, i32) {
    %c0_i32 = arith.constant 0 : i32
    %c0_i32_0 = arith.constant 0 : i32
    return %c0_i32, %arg0 : i32, i32
  }
  func.func @transform_1(%arg0: i32) -> (i32, i32) {
    %c0_i32 = arith.constant 0 : i32
    %c0_i32_0 = arith.constant 0 : i32
    %c0_i32_1 = arith.constant 0 : i32
    return %c0_i32, %c0_i32_0 : i32, i32
  }
  func.func @transform_2(%arg0: i32) -> (i32, i32) {
    %c0_i32 = arith.constant 0 : i32
    %c0_i32_0 = arith.constant 0 : i32
    %c0_i32_1 = arith.constant 0 : i32
    return %c0_i32, %c0_i32_0 : i32, i32
  }
  func.func @transform_3(%arg0: i32) -> (i32, i32) {
    %c0_i32 = arith.constant 0 : i32
    %c0_i32_0 = arith.constant 0 : i32
    %c0_i32_1 = arith.constant 0 : i32
    return %c0_i32, %c0_i32_0 : i32, i32
  }
  func.func @transform_4(%arg0: i32) -> (i32, i32) {
    %c0_i32 = arith.constant 0 : i32
    %c0_i32_0 = arith.constant 0 : i32
    %c0_i32_1 = arith.constant 0 : i32
    return %c0_i32, %c0_i32_0 : i32, i32
  }
  func.func @transform_5(%arg0: i32) -> (i32, i32) {
    %c0_i32 = arith.constant 0 : i32
    %c0_i32_0 = arith.constant 0 : i32
    %c0_i32_1 = arith.constant 0 : i32
    return %c0_i32, %c0_i32_0 : i32, i32
  }
  func.func @transform_6(%arg0: i32) -> (i32, i32) {
    %c0_i32 = arith.constant 0 : i32
    %c0_i32_0 = arith.constant 0 : i32
    %c0_i32_1 = arith.constant 0 : i32
    return %c0_i32, %c0_i32_0 : i32, i32
  }
  func.func @transform_7(%arg0: i32) -> (i32, i32) {
    %c0_i32 = arith.constant 0 : i32
    %c0_i32_0 = arith.constant 0 : i32
    %c0_i32_1 = arith.constant 0 : i32
    return %c0_i32, %c0_i32_0 : i32, i32
  }
  func.func @transform_8(%arg0: i32) -> (i32, i32) {
    %c0_i32 = arith.constant 0 : i32
    %c0_i32_0 = arith.constant 0 : i32
    %c0_i32_1 = arith.constant 0 : i32
    return %c0_i32, %c0_i32_0 : i32, i32
  }
  func.func @transform_9(%arg0: i32) -> (i32, i32) {
    %c0_i32 = arith.constant 0 : i32
    %c0_i32_0 = arith.constant 0 : i32
    return %c0_i32, %arg0 : i32, i32
  }
}

</mosaic_0001>

<bundles_post_ra>
// kernel: _mlp_pallas.1
= control target key start
LH: loop header
LB: loop body
LE: loop exit
PB: predicated region body
PF: predicated region fallthrough
CT: control target
= control target key end

     0   :  { %s708_s0 = inlined_call_operand.vmem [shape: bf16[7,128], index: 0, kind: input, shape index: {}]   ;;  %s709_s1 = inlined_call_operand.vmem [shape: bf16[64,7], index: 1, kind: input, shape index: {}]   ;;  %s710_s2 = inlined_call_operand.vmem [shape: f32[64,1], index: 2, kind: input, shape index: {}]   ;;  %s711_s3 = inlined_call_operand.vmem [shape: bf16[32,64], index: 3, kind: input, shape index: {}]   ;;  %s712_s4 = inlined_call_operand.vmem [shape: f32[32,1], index: 4, kind: input, shape index: {}]   ;;  %s713_s5 = inlined_call_operand.vmem [shape: bf16[16,32], index: 5, kind: input, shape index: {}]   ;;  %s714_s6 = inlined_call_operand.vmem [shape: f32[16,1], index: 6, kind: input, shape index: {}]   ;;  %s715_s7 = inlined_call_operand.vmem [shape: bf16[1,16], index: 7, kind: input, shape index: {}]   ;;  %s716_s8 = inlined_call_operand.<no memory space> [shape: f32[1,1], index: 8, kind: input, shape index: {}]   ;;  %s717_s9 = inlined_call_operand.hbm [shape: f32[1,128], index: 9, kind: output, shape index: {}]  }
   0x1   :  { %v14_v0 = vstv %s716_s8 }
   0x2   :  { %15 = vst [vmem:[#allocation2] sm:$0x1] %v14_v0 }
   0x3   :  { %v36_v1 = vld [vmem:[%s708_s0] sm:$0xf]  ;;  %vm126_vm0 = vcmask 1042432   ;;  %vm127_vm1 = vcmask 1043456   ;;  %v563_v3 = vmov 65535   ;;  %vm113_vm2 = vcmask 56320  }
   0x4   :  { %v528_v2 = vld [vmem:[%s709_s1] sm:$0xff]   ;;  %v128_v4 = vsel %vm126_vm0, 4294967295, %v563_v3  ;;  %v564_v7 = vmov 0   ;;  %v529_v8 = vld [vmem:[%s709_s1 + $0x8] sm:$0xff]   ;;  %v47_v10 = vld [vmem:[%s710_s2 + $0x10] sm:$0xff] }
   0x5   :  { %v129_v5 = vsel %vm127_vm1, %v128_v4, 0  ;;  %487 = vmatprep.mubr.msk.bf16.mxu0 %vm113_vm2, %v528_v2  ;;  %526 = vset.pattern.permute.xlu0 %v564_v7  ;;  %v45_v9 = vld [vmem:[%s710_s2] sm:$0xff]  ;;  %v530_v11 = vld [vmem:[%s709_s1 + $0x10] sm:$0xff]   ;;  %v46_v12 = vld [vmem:[%s710_s2 + $0x8] sm:$0xff] }
   0x6   :  { %v131_v6 = vand.u32 %v129_v5, %v36_v1  ;;  %527 = vset.pattern.permute.xlu1 %v564_v7  ;;  %55 = vperm.xlu0 %526, %v45_v9   ;;  %v48_v13 = vld [vmem:[%s710_s2 + $0x18] sm:$0xff]  ;;  %v49_v14 = vld [vmem:[%s710_s2 + $0x20] sm:$0xff]  ;;  %v50_v15 = vld [vmem:[%s710_s2 + $0x28] sm:$0xff] }
   0x7   :  { %65 = vperm.xlu1 %527, %v47_v10  }
   0x8   :  { %485 = vmatprep.subr.bf16.mxu0 %v131_v6 }
   0x9   :  { %486 = vmatpush3.bf16.msra.mxu0 %v131_v6 }
   0xa   :  { %60 = vperm.xlu0 %526, %v46_v12  }
   0xb   :  { %70 = vperm.xlu1 %527, %v48_v13  }
   0xc   :  { %488 = vmatmul.mubr.msk.bf16.vlgmr.msra.gmra.mrb[0].mxu0 %vm113_vm2, %v529_v8 }
   0xd   :  { %491 = vmatprep.mubr.msk.bf16.mxu0 %vm113_vm2, %v530_v11 }
   0xe   :  { %16 = vsyncpa [#allocation4], 0  ;;  %v531_v16 = vld [vmem:[%s709_s1 + $0x18] sm:$0xff]   ;;  %75 = vperm.xlu0 %526, %v49_v14   ;;  %v51_v17 = vld [vmem:[%s710_s2 + $0x30] sm:$0xff]  ;;  %vm248_vm3 = vcmask 523264   ;;  %v565_v0 = vmov 0.0  }
   0xf   :  { %80 = vperm.xlu1 %527, %v50_v15   ;;  %v52_v18 = vld [vmem:[%s710_s2 + $0x38] sm:$0xff]  ;;  %v214_v19 = vld [vmem:[%s712_s4] sm:$0xff]  ;;  %v215_v20 = vld [vmem:[%s712_s4 + $0x8] sm:$0xff]  ;;  %507 = vmatprep.subr.bf16.mxu0 %v565_v0  ;;  %vm566_vm4 = vmmov 0   ;;  %vm329_vm5 = vcmask 261120   ;;  %vm388_vm6 = vcmask 130048  }
  0x10   :  { %v216_v21 = vld [vmem:[%s712_s4 + $0x10] sm:$0xff]  ;;  %v217_v22 = vld [vmem:[%s712_s4 + $0x18] sm:$0xff]  ;;  %v312_v23 = vld [vmem:[%s714_s6] sm:$0xff] }
  0x11   :  { %v313_v24 = vld [vmem:[%s714_s6 + $0x8] sm:$0xff]  ;;  %v378_v25 = vld [vmem:[#allocation2] sm:$0x1] }
  0x12   :  { %85 = vperm.xlu0 %526, %v51_v17   ;;  %v532_v26 = vld [vmem:[%s711_s3] sm:$0xff]   ;;  %v533_v63 = vld [vmem:[%s711_s3 + $0x8] sm:$0xff]  }
  0x13   :  { %90 = vperm.xlu1 %527, %v52_v18   ;;  %503 = vmatprep.mubr.msk.bf16.mxu1 %vm248_vm3, %v532_v26 }
  0x14   :  { %492 = vmatmul.mubr.msk.bf16.gmra.mrb[4].mxu0 %vm113_vm2, %v531_v16 }
  0x15   :  { %511 = vmatprep.mubr.msk.bf16.mxu0 %vm566_vm4, %v565_v0 }
  0x16   :  { %220 = vperm.xlu0 %526, %v214_v19   ;;  %v534_v19 = vld [vmem:[%s713_s5] sm:$0xff]   ;;  %s567_s5 = smov [#allocation3]  }
  0x17   :  { %225 = vperm.xlu1 %527, %v215_v20   ;;  %s445_s27 = sshll.u32 %s567_s5, 4  ;;  %s446_s27 = int_to_ptr.vmem [resolvable:$true] %s445_s27 }
  0x18   :  { %s543_s28 = scalar_lea.vmem %s446_s27, 32  ;;  %p544_p1 = scmp.lt.s32.totalorder %s446_s27, %s446_s27 }
  0x1a   :  { %230 = vperm.xlu0 %526, %v216_v21  }
  0x1b   :  { %235 = vperm.xlu1 %527, %v217_v22  }
  0x1e   :  { %316 = vperm.xlu0 %526, %v312_v23  }
  0x1f   :  { %321 = vperm.xlu1 %527, %v313_v24  }
  0x22   :  { %381 = vperm.xlu0 %526, %v378_v25  }
  0x85   :  { %v56_v27 = vpop.permute.xlu0 %55 }
  0x86   :  { %v66_v28 = vpop.permute.xlu1 %65 }
  0x89   :  { %v61_v29 = vpop.permute.xlu0 %60 }
  0x8a   :  { %v71_v30 = vpop.permute.xlu1 %70 }
  0x8d   :  { %v76_v34 = vpop.permute.xlu0 %75 }
  0x8e   :  { %v81_v39 = vpop.permute.xlu1 %80 }
  0x91   :  { %v86_v46 = vpop.permute.xlu0 %85 }
  0x92   :  { %v91_v51 = vpop.permute.xlu1 %90 }
  0x95   :  { %v221_v1 = vpop.permute.xlu0 %220 }
  0x96   :  { %v226_v2 = vpop.permute.xlu1 %225 }
  0x99   :  { %v231_v3 = vpop.permute.xlu0 %230 }
  0x9a   :  { %v236_v7 = vpop.permute.xlu1 %235 }
  0x9d   :  { %v317_v20 = vpop.permute.xlu0 %316 }
  0x9e   :  { %v322_v24 = vpop.permute.xlu1 %321 }
  0xdf   :  { %v489_v31 = vpop.f32.mrb[0].mxu0 }
  0xe0   :  { %v176_v32 = vadd.f32 %v489_v31, %v66_v28  ;;  %v167_v33 = vpop.f32.mrb[1].mxu0  ;;  %v376_v31 = vld [vmem:[%s715_s7] sm:$0x1]  ;;  %s539_s7 = scalar_lea.vmem %s446_s27, 16 }
  0xe1   :  { %v168_v35 = vadd.f32 %v167_v33, %v56_v27  ;;  %v490_v36 = vpop.f32.mrb[2].mxu0  ;;  %p540_p0 = scmp.ne.s32.totalorder %s446_s27, %s539_s7  ;;  %p545_p2 = scmp.lt.s32.totalorder %s543_s28, %s539_s7 }
  0xe2   :  { %v179_v37 = vadd.f32 %v490_v36, %v71_v30  ;;  %v170_v38 = vpop.f32.mrb[3].mxu0  ;;  %v200_v41 = vmax.f32 %v176_v32, 0.0  ;;  %v384_v32 = vlaneseq }
  0xe3   :  { %v171_v40 = vadd.f32 %v170_v38, %v61_v29  ;;  %v198_v43 = vmax.f32 %v168_v35, 0.0  ;;  %v382_v35 = vpop.permute.xlu0 %381  ;;  %p546_p3 = por %p545_p2, %p544_p1 }
  0xe4   :  { %v201_v42 = vmax.f32 %v179_v37, 0.0  ;;  %v385_v33 = vshrl.u32 %v384_v32, 7 }
  0xe5   :  { %v199_v44 = vmax.f32 %v171_v40, 0.0  ;;  %p547_p4 = pnand %p546_p3, %p540_p0 }
  0xe6   :  { %v211_v45 = vpack.c.bf16 %v201_v42, %v200_v41 }
  0xe7   :  { %v493_v47 = vpop.f32.mrb[4].mxu0  ;;  %v210_v48 = vpack.c.bf16 %v199_v44, %v198_v43 }
  0xe8   :  { %v192_v49 = vadd.f32 %v493_v47, %v86_v46  ;;  %v183_v50 = vpop.f32.mrb[5].mxu0 }
  0xe9   :  { %v184_v52 = vadd.f32 %v183_v50, %v76_v34  ;;  %v494_v53 = vpop.f32.mrb[6].mxu0  ;;  %495 = vmatprep.subr.bf16.mxu1 %v210_v48  ;;  %v386_v34 = vsub.s32 0, %v385_v33 }
  0xea   :  { %v195_v54 = vadd.f32 %v494_v53, %v91_v51  ;;  %v186_v55 = vpop.f32.mrb[7].mxu0  ;;  %496 = vmatpush3.bf16.msra.mxu1 %v210_v48  ;;  %v204_v57 = vmax.f32 %v192_v49, 0.0 }
  0xeb   :  { %v187_v56 = vadd.f32 %v186_v55, %v81_v39  ;;  %497 = vmatprep.subr.bf16.mxu1 %v211_v45  ;;  %v202_v59 = vmax.f32 %v184_v52, 0.0  ;;  %v387_v36 = vrot.slane %v382_v35, %v386_v34 }
  0xec   :  { %v205_v58 = vmax.f32 %v195_v54, 0.0 }
  0xed   :  { %v203_v60 = vmax.f32 %v187_v56, 0.0 }
  0xee   :  { %v213_v61 = vpack.c.bf16 %v205_v58, %v204_v57  ;;  %498 = vmatpush3.bf16.msra.mxu1 %v211_v45 }
  0xef   :  { %v212_v62 = vpack.c.bf16 %v203_v60, %v202_v59 }
  0xf1   :  { %499 = vmatprep.subr.bf16.mxu1 %v212_v62 }
  0xf2   :  { %500 = vmatpush3.bf16.msra.mxu1 %v212_v62 }
  0xf3   :  { %501 = vmatprep.subr.bf16.mxu1 %v213_v61 }
  0xf6   :  { %502 = vmatpush3.bf16.msra.mxu1 %v213_v61 }
  0xf7   :  { %515 = vmatprep.subr.bf16.mxu1 %v565_v0 }
  0xf9   :  { %504 = vmatmul.mubr.msk.bf16.vlgmr.msra.gmra.mrb[0].mxu1 %vm248_vm3, %v533_v63 }
  0xfa   :  { %517 = vmatprep.mubr.msk.bf16.mxu1 %vm566_vm4, %v565_v0 }
 0x1cc   :  { %v505_v4 = vpop.f32.mrb[0].mxu1 }
 0x1cd   :  { %v298_v5 = vadd.f32 %v505_v4, %v231_v3  ;;  %v289_v6 = vpop.f32.mrb[1].mxu1 }
 0x1ce   :  { %v290_v8 = vadd.f32 %v289_v6, %v221_v1  ;;  %v506_v9 = vpop.f32.mrb[2].mxu1 }
 0x1cf   :  { %v301_v10 = vadd.f32 %v506_v9, %v236_v7  ;;  %v292_v11 = vpop.f32.mrb[3].mxu1  ;;  %v306_v13 = vmax.f32 %v298_v5, 0.0 }
 0x1d0   :  { %v293_v12 = vadd.f32 %v292_v11, %v226_v2  ;;  %v304_v15 = vmax.f32 %v290_v8, 0.0 }
 0x1d1   :  { %v307_v14 = vmax.f32 %v301_v10, 0.0 }
 0x1d2   :  { %v305_v16 = vmax.f32 %v293_v12, 0.0 }
 0x1d3   :  { %v311_v17 = vpack.c.bf16 %v307_v14, %v306_v13 }
 0x1d4   :  { %v310_v18 = vpack.c.bf16 %v305_v16, %v304_v15 }
 0x1d6   :  { %508 = vmatpush3.bf16.msra.mxu0 %v310_v18 }
 0x1d7   :  { %509 = vmatprep.subr.bf16.mxu0 %v565_v0 }
 0x1da   :  { %510 = vmatpush3.bf16.msra.mxu0 %v311_v17 }
 0x1dd   :  { %512 = vmatmul.mubr.msk.bf16.vlgmr.msra.gmra.mrb[8].mxu0 %vm329_vm5, %v534_v19 }
 0x2b0   :  { %v367_v21 = vpop.f32.mrb[8].mxu0 }
 0x2b1   :  { %v368_v22 = vadd.f32 %v367_v21, %v317_v20  ;;  %v513_v23 = vpop.f32.mrb[9].mxu0 }
 0x2b2   :  { %v370_v25 = vpop.f32.mrb[10].mxu0 }
 0x2b3   :  { %v371_v26 = vadd.f32 %v370_v25, %v322_v24  ;;  %v514_v27 = vpop.f32.mrb[11].mxu0  ;;  %v374_v28 = vmax.f32 %v368_v22, 0.0 }
 0x2b5   :  { %v375_v29 = vmax.f32 %v371_v26, 0.0 }
 0x2b7   :  { %v377_v30 = vpack.c.bf16 %v375_v29, %v374_v28 }
 0x2b9   :  { %516 = vmatpush3.bf16.msra.mxu1 %v377_v30 }
 0x2bc   :  { %518 = vmatmul.mubr.msk.bf16.vlgmr.msra.gmra.mrb[4].mxu1 %vm388_vm6, %v376_v31 }
 0x38f   :  { %v426_v37 = vpop.f32.mrb[4].mxu1 }
 0x390   :  { %v427_v38 = vadd.f32 %v426_v37, %v387_v36  ;;  %v519_v39 = vpop.f32.mrb[5].mxu1 }
 0x391   :  { %v429_v40 = vpop.f32.mrb[6].mxu1 }
 0x392   :  { %v468_v41 = vmul.f32 -1.442695, %v427_v38  ;;  %v520_v42 = vpop.f32.mrb[7].mxu1 }
 0x394   :  { %535 = vpow2.f32 %v468_v41 }
 0x39e   :  { %v536_v43 = vpop.eup %535 }
 0x39f   :  { %v435_v44 = vadd.f32 1.0, %v536_v43 }
 0x3a1   :  { %537 = vrcp.f32 %v435_v44 }
 0x3ab   :  { %v538_v45 = vpop.eup %537 }
 0x3ac   :  { %438 = vst [vmem:[#allocation3] sm:$0x1] %v538_v45 }
 0x3ad   :  { %550 = shalt.err (!%p547_p4)
}
 0x3ae   :  { %s551_s10 = scalar_lea.hbm %s717_s9, 16 }
 0x3af   :  { %p552_p5 = scmp.ne.s32.totalorder %s717_s9, %s551_s10  ;;  %p555_p6 = scmp.lt.u32.totalorder %s551_s10, %s717_s9 }
 0x3b1   :  { %p557_p7 = pnand %p555_p6, %p552_p5 }
 0x3b3   :  { %560 = shalt.err (!%p557_p7)
}
 0x3b4   :  { %448 = dma.vmem_to_hbm [thread:$0]  %s446_s27, 16, %s717_s9, [#allocation4]  }
 0x3b5   :  { %561 = dma.done.wait [#allocation4], 16  }
 0x3b6   :  { %562 = vsyncadd [#allocation4], 4294967280 }
 0x3b7   :  { %452 = vsyncpa [#allocation4], 1 }

</bundles_post_ra>
